<compile_context>
chip_gen: v6e
topology: v6e:2x2x1
jax: 0.10.0
libtpu: 0.0.40
codegen_flags: <defaults>
</compile_context>

<pallas_src>
import functools
import math

import jax
import jax.numpy as jnp
from jax.experimental import pallas as pl
from jax.experimental.pallas import tpu as pltpu


def _round_up(x, m):
    return ((x + m - 1) // m) * m


def _vmem_budget_bytes():
    """Per-generation VMEM budget for tile sizing.

    ~3/4 of physical VMEM, capped at 96 MiB: v5e/v6e (128 MiB) -> 96 MiB,
    v7x (64 MiB) -> 48 MiB.  Falls back to 48 MiB if the query fails.
    """
    cap = 64 * 1024 * 1024
    try:
        info = pltpu.get_tpu_info()
        cap = int(getattr(info, "vmem_capacity_bytes", cap)) or cap
    except Exception:
        pass
    return min((cap * 3) // 4, 96 * 1024 * 1024)


# ---------------------------------------------------------------------------
# Kernel body (covers all four variants: reassoc x multi_k, bias optional).
# Grid is (row_tiles,) for the single-k path or (row_tiles, k_tiles) with the
# contraction axis last ("arbitrary") for the tiled-accumulator path.
# ---------------------------------------------------------------------------
def _gcn_kernel(*refs, reassoc, has_bias, multi_k):
    refs = list(refs)
    adj_ref = refs.pop(0)
    m_ref = refs.pop(0)                       # x (reassoc) or support (plain)
    w_ref = refs.pop(0) if reassoc else None  # f32, VMEM-resident
    b_ref = refs.pop(0) if has_bias else None  # f32, VMEM-resident
    o_ref = refs.pop(0)
    acc_ref = refs.pop(0) if multi_k else None

    def _epilogue(acc_f32):
        out = acc_f32
        if reassoc:
            # Small epilogue matmul; LHS stays f32 for accuracy, W is f32.
            out = jnp.dot(out, w_ref[...], preferred_element_type=jnp.float32)
        if has_bias:
            out = out + b_ref[...]            # f32 epilogue, single final cast
        o_ref[...] = out.astype(o_ref.dtype)

    # Dominant N^2 matmul on the MXU with f32 accumulation.
    part = jnp.dot(adj_ref[...], m_ref[...], preferred_element_type=jnp.float32)

    if not multi_k:
        _epilogue(part)
    else:
        k = pl.program_id(1)

        @pl.when(k == 0)
        def _():
            acc_ref[...] = jnp.zeros_like(acc_ref)

        acc_ref[...] += part

        @pl.when(k == pl.num_programs(1) - 1)
        def _():
            _epilogue(acc_ref[...])


# ---------------------------------------------------------------------------
# Wrapper
# ---------------------------------------------------------------------------
def graph_convolution(x, adj, weight, bias=None, *, tm_max=512, tk_max=4096,
                      compute_dtype=None):
    """Pallas TPU implementation of GraphConvolution.forward.

    x:      [N, in_features]
    adj:    [N, N]
    weight: [in_features, out_features]
    bias:   [out_features] or None
    returns [N, out_features] in x.dtype
    """
    n, in_f = x.shape
    assert adj.shape == (n, n)
    assert weight.shape[0] == in_f
    out_f = weight.shape[1]

    out_dtype = x.dtype
    cdt = jnp.dtype(compute_dtype) if compute_dtype is not None else jnp.dtype(x.dtype)
    has_bias = bias is not None

    in_f_p = _round_up(in_f, 128)     # lane-dense small operands
    out_f_p = _round_up(out_f, 128)   # lane-dense output (unmasked vst)

    budget = _vmem_budget_bytes()
    e_adj = cdt.itemsize
    e_m = cdt.itemsize
    e_out = jnp.dtype(out_dtype).itemsize

    # Reassociate ((adj @ x) @ W) when it cuts FLOPs on the dominant N^2
    # matmul and the resident f32 weight fits comfortably in VMEM.
    reassoc = (in_f <= out_f) and (2 * in_f_p * out_f_p * 4) <= budget // 2
    f_m_p = in_f_p if reassoc else out_f_p

    def footprint(tm_, tk_, multi_k_):
        fp = 2 * tm_ * tk_ * e_adj            # adj tile (double-buffered)
        fp += 2 * tk_ * f_m_p * e_m           # streamed x / support tile
        if reassoc:
            fp += 2 * in_f_p * out_f_p * 4    # resident f32 weight
        if has_bias:
            fp += 2 * out_f_p * 4
        fp += 2 * tm_ * out_f_p * e_out       # output tile
        if multi_k_:
            fp += tm_ * f_m_p * 4             # f32 accumulator scratch
        return fp

    # ---- row tile: prefer one that divides N exactly (no adj row padding) --
    def pick_tm():
        cap = max(8, (min(tm_max, max(n, 8)) // 8) * 8)
        best = None
        t = cap
        while t >= 8:
            if n % t == 0:
                best = t
                break
            t -= 8
        if best is not None:
            # Guarantee >=2 "parallel" row tiles for the two v7x TensorCores
            # when it is free (no padding, each tile still a sublane multiple).
            if best == n and n >= 16 and n % 16 == 0:
                best = n // 2
            return best, n
        if n <= tm_max:
            return n, n                        # single full-row tile, no pad
        return cap, _round_up(n, cap)          # last resort: pad rows

    tm, n_rows_p = pick_tm()

    # ---- contraction tile: full strip (single-k) whenever it fits VMEM -----
    single_k = (n <= tk_max) and footprint(tm, n, False) <= budget
    if single_k:
        tk, n_k_p, multi_k = n, n, False
    else:
        multi_k = True
        tk = min((max(tk_max, 128) // 128) * 128, _round_up(n, 128))
        while tk > 128 and footprint(tm, tk, True) > budget:
            tk -= 128
        while tm > 8 and footprint(tm, tk, True) > budget:
            tm = max(8, ((tm // 2) // 8) * 8)
        n_rows_p = _round_up(n, tm)
        n_k_p = _round_up(n, tk)

    # ---- input prep: pad/cast only when actually required ------------------
    def _pad2(a, pad_r, pad_c, dtype):
        if pad_r or pad_c:
            a = jnp.pad(a, ((0, pad_r), (0, pad_c)))
        if a.dtype != dtype:
            a = a.astype(dtype)
        return a

    # In the common case this is a no-op (no extra N^2 HBM pass on adj).
    adj_in = _pad2(adj, n_rows_p - n, n_k_p - n, cdt)

    if reassoc:
        m_in = _pad2(x, n_k_p - n, in_f_p - in_f, cdt)
        w_in = _pad2(weight, in_f_p - in_f, out_f_p - out_f, jnp.float32)
    else:
        # Standard order: fold W into support = x @ W exactly once, outside
        # the kernel (no per-row-tile recompute inside the grid).
        support = jnp.dot(x, weight, preferred_element_type=jnp.float32)
        m_in = _pad2(support, n_k_p - n, out_f_p - out_f, cdt)
        w_in = None

    if has_bias:
        b_in = bias.astype(jnp.float32)
        if out_f_p != out_f:
            b_in = jnp.pad(b_in, (0, out_f_p - out_f))
        b_in = b_in.reshape(1, out_f_p)

    # ---- grid & specs -------------------------------------------------------
    if multi_k:
        grid = (n_rows_p // tm, n_k_p // tk)
        adj_spec = pl.BlockSpec((tm, tk), lambda i, k: (i, k))
        m_spec = pl.BlockSpec((tk, f_m_p), lambda i, k: (k, 0))
        const_spec = lambda shape: pl.BlockSpec(shape, lambda i, k: (0, 0))
        out_spec = pl.BlockSpec((tm, out_f_p), lambda i, k: (i, 0))
        scratch = [pltpu.VMEM((tm, f_m_p), jnp.float32)]
        dims = ("parallel", "arbitrary")
    else:
        grid = (n_rows_p // tm,)
        adj_spec = pl.BlockSpec((tm, n_k_p), lambda i: (i, 0))
        # Constant block index -> fetched once, stays resident across row tiles.
        m_spec = pl.BlockSpec((n_k_p, f_m_p), lambda i: (0, 0))
        const_spec = lambda shape: pl.BlockSpec(shape, lambda i: (0, 0))
        out_spec = pl.BlockSpec((tm, out_f_p), lambda i: (i, 0))
        scratch = []
        dims = ("parallel",)

    in_specs = [adj_spec, m_spec]
    args = [adj_in, m_in]
    if reassoc:
        in_specs.append(const_spec((in_f_p, out_f_p)))
        args.append(w_in)
    if has_bias:
        in_specs.append(const_spec((1, out_f_p)))
        args.append(b_in)

    fp = footprint(tm, tk, multi_k)
    vmem_limit = int(min(budget, max(2 * fp, 16 * 1024 * 1024)))

    kernel = functools.partial(_gcn_kernel, reassoc=reassoc,
                               has_bias=has_bias, multi_k=multi_k)

    out_p = pl.pallas_call(
        kernel,
        out_shape=jax.ShapeDtypeStruct((n_rows_p, out_f_p), out_dtype),
        grid_spec=pltpu.PrefetchScalarGridSpec(
            num_scalar_prefetch=0,
            grid=grid,
            in_specs=in_specs,
            out_specs=out_spec,
            scratch_shapes=scratch,
        ),
        compiler_params=pltpu.CompilerParams(
            dimension_semantics=dims,
            vmem_limit_bytes=vmem_limit,
        ),
    )(*args)

    if n_rows_p == n and out_f_p == out_f:
        return out_p
    return out_p[:n, :out_f]


def graph_convolution_ref(x, adj, weight, bias):
    out = adj @ (x @ weight)
    return out if bias is None else out + bias


if __name__ == "__main__":
    # Shapes consistent with the module's forward: N nodes, in_f -> out_f.
    N = 16
    in_features = 32
    out_features = 64

    key = jax.random.PRNGKey(0)
    kx, kadj, kw, kb = jax.random.split(key, 4)

    x = jax.random.normal(kx, (N, in_features), dtype=jnp.float32)

    # Symmetric, row-normalized adjacency (typical GCN input).
    a = jax.random.uniform(kadj, (N, N), dtype=jnp.float32)
    a = (a + a.T) * 0.5 + jnp.eye(N, dtype=jnp.float32)
    adj = a / jnp.sum(a, axis=1, keepdims=True)

    # Parameter init mirroring reset_parameters(): uniform(-stdv, stdv).
    stdv = 1.0 / math.sqrt(out_features)
    weight = jax.random.uniform(kw, (in_features, out_features),
                                dtype=jnp.float32, minval=-stdv, maxval=stdv)
    bias = jax.random.uniform(kb, (out_features,), dtype=jnp.float32,
                              minval=-stdv, maxval=stdv)

    # 1) bias, in_f < out_f  -> reassociated, single-k (fits VMEM strip)
    out = jax.block_until_ready(graph_convolution(x, adj, weight, bias))
    ref = graph_convolution_ref(x, adj, weight, bias)
    assert out.shape == (N, out_features)
    assert jnp.allclose(out, ref, atol=1e-4, rtol=1e-4), "mismatch (reassoc/bias)"

    # 2) no-bias path
    out_nb = jax.block_until_ready(graph_convolution(x, adj, weight, None))
    ref_nb = graph_convolution_ref(x, adj, weight, None)
    assert jnp.allclose(out_nb, ref_nb, atol=1e-4, rtol=1e-4), "mismatch (no bias)"

    # 3) in_f > out_f -> standard order (support precomputed outside kernel)
    w2 = jax.random.uniform(kw, (in_features, 8), dtype=jnp.float32,
                            minval=-stdv, maxval=stdv)
    b2 = bias[:8]
    out2 = jax.block_until_ready(graph_convolution(x, adj, w2, b2))
    ref2 = graph_convolution_ref(x, adj, w2, b2)
    assert jnp.allclose(out2, ref2, atol=1e-4, rtol=1e-4), "mismatch (standard)"

    # 4) larger N, tiled multi-k accumulator path (forced via small tile caps)
    N2 = 256
    kx2, kadj2 = jax.random.split(kadj, 2)
    x2 = jax.random.normal(kx2, (N2, in_features), dtype=jnp.float32)
    a2 = jax.random.uniform(kadj2, (N2, N2), dtype=jnp.float32)
    a2 = (a2 + a2.T) * 0.5 + jnp.eye(N2, dtype=jnp.float32)
    adj2 = a2 / jnp.sum(a2, axis=1, keepdims=True)

    out4 = jax.block_until_ready(
        graph_convolution(x2, adj2, weight, bias, tm_max=64, tk_max=128))
    ref4 = graph_convolution_ref(x2, adj2, weight, bias)
    assert jnp.allclose(out4, ref4, atol=1e-4, rtol=1e-4), "mismatch (multi-k)"

    # 5) multi-k + standard order, no bias
    out5 = jax.block_until_ready(
        graph_convolution(x2, adj2, w2, None, tm_max=64, tk_max=128))
    ref5 = graph_convolution_ref(x2, adj2, w2, None)
    assert jnp.allclose(out5, ref5, atol=1e-4, rtol=1e-4), "mismatch (multi-k std)"

    print("KERNEL_OK")
</pallas_src>

<mosaic_0001>
module attributes {stable_mosaic.version = 11 : i64} {
  func.func @_gcn_kernel(%arg0: i32, %arg1: memref<8x16xf32, #tpu.memory_space<vmem>>, %arg2: memref<16x128xf32, #tpu.memory_space<vmem>>, %arg3: memref<128x128xf32, #tpu.memory_space<vmem>>, %arg4: memref<1x128xf32, #tpu.memory_space<vmem>>, %arg5: memref<8x128xf32, #tpu.memory_space<vmem>>) attributes {dimension_semantics = [#tpu.dimension_semantics<parallel>], iteration_bounds = array<i64: 2>, scalar_prefetch = 0 : i64, scratch_operands = 0 : i64, tpu.core_type = #tpu.core_type<tc>, window_params = [{transform_indices = @transform_0, window_bounds = array<i64: 8, 16>}, {pipeline_mode = #tpu.pipeline_mode<synchronous>, transform_indices = @transform_1, window_bounds = array<i64: 16, 128>}, {pipeline_mode = #tpu.pipeline_mode<synchronous>, transform_indices = @transform_2, window_bounds = array<i64: 128, 128>}, {pipeline_mode = #tpu.pipeline_mode<synchronous>, transform_indices = @transform_3, window_bounds = array<i64: 1, 128>}, {transform_indices = @transform_4, window_bounds = array<i64: 8, 128>}]} {
    %c0 = arith.constant 0 : index
    %c0_0 = arith.constant 0 : index
    %0 = vector.load %arg1[%c0, %c0_0] : memref<8x16xf32, #tpu.memory_space<vmem>>, vector<8x16xf32>
    %c0_1 = arith.constant 0 : index
    %c0_2 = arith.constant 0 : index
    %1 = vector.load %arg2[%c0_1, %c0_2] : memref<16x128xf32, #tpu.memory_space<vmem>>, vector<16x128xf32>
    %cst = arith.constant dense<0.000000e+00> : vector<8x128xf32>
    %2 = tpu.matmul %0, %1, %cst {dimension_numbers = #tpu.dot_dimension_numbers<[1], [0], [0], [1], [0, 0, 1, 1], [], []>} : vector<8x16xf32>, vector<16x128xf32>, vector<8x128xf32> -> vector<8x128xf32>
    %c0_3 = arith.constant 0 : index
    %c0_4 = arith.constant 0 : index
    %3 = vector.load %arg3[%c0_3, %c0_4] : memref<128x128xf32, #tpu.memory_space<vmem>>, vector<128x128xf32>
    %cst_5 = arith.constant dense<0.000000e+00> : vector<8x128xf32>
    %4 = tpu.matmul %2, %3, %cst_5 {dimension_numbers = #tpu.dot_dimension_numbers<[1], [0], [0], [1], [0, 0, 1, 1], [], []>} : vector<8x128xf32>, vector<128x128xf32>, vector<8x128xf32> -> vector<8x128xf32>
    %c0_6 = arith.constant 0 : index
    %c0_7 = arith.constant 0 : index
    %5 = vector.load %arg4[%c0_6, %c0_7] : memref<1x128xf32, #tpu.memory_space<vmem>>, vector<1x128xf32>
    %6 = vector.broadcast %5 : vector<1x128xf32> to vector<8x128xf32>
    %7 = arith.addf %4, %6 : vector<8x128xf32>
    %c0_8 = arith.constant 0 : index
    %c0_9 = arith.constant 0 : index
    %8 = vector.load %arg5[%c0_8, %c0_9] : memref<8x128xf32, #tpu.memory_space<vmem>>, vector<8x128xf32>
    tpu.vector_store %arg5[%c0_8, %c0_9], %7 {strides = array<i32>} : memref<8x128xf32, #tpu.memory_space<vmem>>, vector<8x128xf32>,
    return
  }
  func.func @transform_0(%arg0: i32) -> (i32, i32) {
    %c0_i32 = arith.constant 0 : i32
    %c0_i32_0 = arith.constant 0 : i32
    return %arg0, %c0_i32 : i32, i32
  }
  func.func @transform_1(%arg0: i32) -> (i32, i32) {
    %c0_i32 = arith.constant 0 : i32
    %c0_i32_0 = arith.constant 0 : i32
    %c0_i32_1 = arith.constant 0 : i32
    return %c0_i32, %c0_i32_0 : i32, i32
  }
  func.func @transform_2(%arg0: i32) -> (i32, i32) {
    %c0_i32 = arith.constant 0 : i32
    %c0_i32_0 = arith.constant 0 : i32
    %c0_i32_1 = arith.constant 0 : i32
    return %c0_i32, %c0_i32_0 : i32, i32
  }
  func.func @transform_3(%arg0: i32) -> (i32, i32) {
    %c0_i32 = arith.constant 0 : i32
    %c0_i32_0 = arith.constant 0 : i32
    %c0_i32_1 = arith.constant 0 : i32
    return %c0_i32, %c0_i32_0 : i32, i32
  }
  func.func @transform_4(%arg0: i32) -> (i32, i32) {
    %c0_i32 = arith.constant 0 : i32
    %c0_i32_0 = arith.constant 0 : i32
    return %arg0, %c0_i32 : i32, i32
  }
}

</mosaic_0001>

<bundles_post_ra>
// kernel: tpu_custom_call.1
= control target key start
LH: loop header
LB: loop body
LE: loop exit
PB: predicated region body
PF: predicated region fallthrough
CT: control target
= control target key end

     0   :  { %9 = vsyncpa [#allocation3], 0  ;;  %s1028_s0 = inlined_call_operand.hbm [shape: f32[16,16], index: 0, kind: input, shape index: {}]   ;;  %s1029_s1 = inlined_call_operand.hbm [shape: f32[16,128], index: 1, kind: input, shape index: {}]   ;;  %s1030_s2 = inlined_call_operand.hbm [shape: f32[128,128], index: 2, kind: input, shape index: {}]   ;;  %s1031_s3 = inlined_call_operand.vmem [shape: f32[1,128], index: 3, kind: input, shape index: {}]   ;;  %s1032_s4 = inlined_call_operand.hbm [shape: f32[16,128], index: 4, kind: output, shape index: {}]  }
   0x1   :  { %11 = vsyncpa [#allocation3 + $0x1], 0 }
   0x2   :  { %12 = vsyncpa [#allocation6], 0 }
   0x3   :  { %13 = vsyncpa [#allocation4], 0 }
   0x4   :  { %15 = vsyncpa [#allocation4 + $0x1], 0  ;;  %s850_s15 = smov 0   ;;  %s852_s16 = smov 0  }
   0x5   :  { %s854_s17 = smov 0   ;;  %s856_s18 = smov 0  }
   0x6 LB: > { %s871_s19 = sadd.s32 4294967295, %s815_s18   ;;  %s516_s20 = sadd.s32 4294967294, %s815_s18   ;;  %s815_s18 = sphi %s856_s18, %s1054_s18   ;;  %s811_s17 = sphi %s854_s17, %s1053_s17   ;;  %s807_s16 = sphi %s852_s16, %s1052_s16   ;;  %s803_s15 = sphi %s850_s15, %s1051_s15  }
   0x7   : > { %p41_p0 = scmp.ne.s32.totalorder %s807_s16, %s803_s15  ;;  %p1033_p1 = scmp.eq.s32.totalorder %s871_s19, 0 }
   0x8   : > { %p134_p3 = scmp.eq.s32.totalorder %s516_s20, 1  ;;  %p517_p5 = scmp.ge.s32.totalorder %s815_s18, 1 }
   0x9   : > { %p880_p4 = por %p1033_p1, %p41_p0  ;;  %p141_p7 = scmp.lt.s32.totalorder %s815_s18, 3 }
   0xa   : > { %p885_p6 = por %p134_p3, %p41_p0  ;;  %s817_s24 = smov [#allocation5]  }
   0xb   : > { %s1037_s21 = scalar_select %p880_p4, 1, 0 }
   0xc   : > { %s1038_s22 = scalar_select %p885_p6, 1, 0 }
   0xd   : > { %p890_p8 = pnand %p517_p5, %p141_p7  ;;  %s153_s25 = sshll.u32 %s817_s24, 4  ;;  %s154_s25 = int_to_ptr.vmem [resolvable:$true] %s153_s25 }
   0xe   : > { %s818_s27 = smov [#allocation7]   ;;  %s678_s29 = scalar_lea.vmem %s154_s25, 256 }
   0xf   : > { %s1039_s23 = scalar_select %p890_p8, 1, 0 }
  0x10   : > { %p608_p9 = pneg %p890_p8  ;;  %s166_s28 = sshll.u32 %s818_s27, 4  ;;  %s167_s28 = int_to_ptr.vmem [resolvable:$true] %s166_s28 }
  0x11   : > { %p679_p13 = scmp.ne.s32.totalorder %s154_s25, %s678_s29  ;;  %p686_p5 = scmp.lt.s32.totalorder %s154_s25, %s154_s25 }
  0x12   : > { %p899_p11 = pnand %p608_p9, %p1033_p1  ;;  %p687_p7 = scmp.lt.s32.totalorder %s678_s29, %s678_s29 }
  0x14   : > { %p669_p12 = pneg %p899_p11  ;;  %p688_p10 = por %p687_p7, %p686_p5 }
  0x16   : > { %p681_p0 = pnand %p679_p13, %p669_p12 }
  0x18   : > { %p682_p3 = pneg %p681_p0 }
  0x1a   : > { %p689_p9 = pnand %p688_p10, %p682_p3 }
  0x1c   : > { %692 = shalt.err (!%p689_p9)
}
  0x1d   : > { %s819_s30 = smov 128   ;;  %s820_s5 = smov 8  }
  0x1e   : > { %611 = dma.hbm_to_vmem [thread:$0]  (!%p899_p11), %s1029_s1, 256, %s154_s25, [#allocation6], %s819_s30, %s819_s30, %s820_s5  }
  0x1f   : > { %s704_s8 = scalar_lea.vmem %s167_s28, 2048  ;;  %p712_p2 = scmp.lt.s32.totalorder %s167_s28, %s167_s28 }
  0x20   : > { %p705_p1 = scmp.ne.s32.totalorder %s167_s28, %s704_s8  ;;  %p713_p6 = scmp.lt.s32.totalorder %s704_s8, %s704_s8 }
  0x22   : > { %p707_p13 = pnand %p705_p1, %p669_p12  ;;  %p714_p5 = por %p713_p6, %p712_p2 }
  0x24   : > { %p708_p0 = pneg %p707_p13 }
  0x26   : > { %p715_p10 = pnand %p714_p5, %p708_p0 }
  0x28   : > { %718 = shalt.err (!%p715_p10)
}
  0x29   : > { %614 = dma.hbm_to_vmem [thread:$0]  (!%p899_p11), %s1030_s2, 2048, %s167_s28, [#allocation6], %s819_s30, %s819_s30, %s820_s5  }
  0x2a   : > { %s922_s11 = sadd.s32 1, %s815_s18   ;;  %s28_s12 = sadd.s32 1, %s811_s17 }
  0x2b   : > { %s25_s13 = ssub.s32 %s815_s18, %s922_s11  ;;  %p35_p1 = scmp.ne.s32.totalorder %s811_s17, %s807_s16 }
  0x2c   : > { %p26_p2 = scmp.eq.s32.totalorder %s25_s13, 0  ;;  %p36_p6 = scmp.eq.s32.totalorder %s815_s18, 0 }
  0x2d   : > { %p1041_p12 = scmp.eq.s32.totalorder %s871_s19, 1  ;;  %p625_p7 = scmp.lt.s32.totalorder %s815_s18, 2 }
  0x2e   : > { %s938_s20 = scalar_select %p26_p2, %s811_s17, %s28_s12  }
  0x2f   : > { %p932_p3 = por %p1041_p12, %p35_p1  ;;  %p37_p9 = por %p36_p6, %p35_p1 }
  0x30   : > { %s183_s24 = sand.u32 1, %s811_s17   ;;  %s522_s26 = sshll.u32 %s815_s18, 7 }
  0x31   : > { %s1042_s14 = scalar_select %p932_p3, 1, 0 }
  0x32   : > { %s521_s25 = sshll.u32 %s183_s24, 3  ;;  %s945_s29 = scalar_lea.hbm %s1028_s0, %s522_s26 }
  0x33   : > { %s187_s30 = scalar_lea.vmem [#allocation2], %s521_s25  ;;  %p947_p11 = pnand %p625_p7, %p37_p9 }
  0x34   : > { %s194_s5 = sshll.u32 %s187_s30, 4  ;;  %s184_s7 = scalar_lea.sflag [#allocation3], %s183_s24  ;;  %s195_s5 = int_to_ptr.vmem [resolvable:$true] %s194_s5 }
  0x35   : > { %s719_s8 = scalar_lea.hbm %s945_s29, 128  ;;  %p721_p0 = pneg %p947_p11 }
  0x36   : > { %p720_p13 = scmp.ne.s32.totalorder %s945_s29, %s719_s8  ;;  %s724_s12 = scalar_lea.hbm %s1028_s0, 256 }
  0x37   : > { %p725_p1 = scmp.lt.s32.totalorder %s945_s29, %s1028_s0  ;;  %p726_p2 = scmp.lt.s32.totalorder %s724_s12, %s719_s8 }
  0x38   : > { %p722_p5 = pnand %p721_p0, %p720_p13 }
  0x39   : > { %p727_p6 = por %p726_p2, %p725_p1 }
  0x3a   : > { %p723_p10 = pneg %p722_p5 }
  0x3c   : > { %p728_p12 = pnand %p727_p6, %p723_p10 }
  0x3e   : > { %731 = shalt.err (!%p728_p12)
}
  0x3f   : > { %s732_s26 = scalar_lea.vmem %s195_s5, 128  ;;  %s821_s24 = smov [#allocation2]  }
  0x40   : > { %p733_p7 = scmp.ne.s32.totalorder %s195_s5, %s732_s26  ;;  %s737_s27 = sshll.u32 %s821_s24, 4  ;;  %s738_s27 = int_to_ptr.vmem [resolvable:$false] %s737_s27 }
  0x41   : > { %s739_s28 = scalar_lea.vmem %s738_s27, 256  ;;  %p740_p13 = scmp.lt.s32.totalorder %s195_s5, %s738_s27 }
  0x42   : > { %p735_p9 = pnand %p733_p7, %p721_p0  ;;  %p741_p5 = scmp.lt.s32.totalorder %s739_s28, %s732_s26 }
  0x44   : > { %p736_p3 = pneg %p735_p9  ;;  %p742_p4 = por %p741_p5, %p740_p13 }
  0x46   : > { %p743_p8 = pnand %p742_p4, %p736_p3 }
  0x48   : > { %746 = shalt.err (!%p743_p8)
}
  0x49   : > { %618 = dma.hbm_to_vmem [thread:$0]  (!%p947_p11), %s945_s29, 128, %s195_s5, %s184_s7  }
  0x4a   : > { %p1044_p10 = scmp.ne.s32.totalorder %s1039_s23, 0 }
  0x4b   : > { %s968_s30 = sand.u32 (!%p1044_p10), 1, %s807_s16   ;;  %p1045_p4 = scmp.ne.s32.totalorder (!%p1044_p10), %s1037_s21, 0 }
  0x4c   : > { %203 = sbr.rel (%p1044_p10) target bundleno = 492 (0x1ec), region = 36  ;;  %s524_s8 = sshll.u32 (!%p1044_p10), %s968_s30, 3 }
  0x4d   : > { %s206_s9 = scalar_lea.sflag (!%p1044_p10), [#allocation3], %s968_s30  ;;  %s209_s10 = scalar_lea.vmem (!%p1044_p10), [#allocation2], %s524_s8 }
  0x51   : > { %790 = dma.done.wait (%p1045_p4), %s206_s9, 128  }
  0x52   : > { %792 = vsyncadd (%p1045_p4), %s206_s9, 4294967168  ;;  %p1046_p8 = scmp.eq.s32.totalorder %s871_s19, 0 }
  0x54   : > { %794 = dma.done.wait (%p1046_p8), [#allocation6], 2304   ;;  %p1047_p3 = pmov %p1046_p8 }
  0x55   : > { %v822_v0 = vmov 0.0   ;;  %vm823_vm0 = vmmov 0   ;;  %v244_v1 = vld [vmem:[#allocation5 + $0x8] sm:$0xff]  ;;  %v243_v2 = vld [vmem:[#allocation5] sm:$0xff]  ;;  %v242_v3 = vld [vmem:[%s209_s10] sm:$0xff]  ;;  %vm245_vm1 = vcmask 130048  }
  0x56   : > { %796 = vsyncadd (%p1047_p3), [#allocation6], 4294964992  ;;  %554 = vmatprep.subr.mxu0 %v822_v0  ;;  %558 = vmatprep.mubr.msk.f32.mxu0 %vm823_vm0, %v822_v0  ;;  %v334_v4 = vld [vmem:[#allocation7 + $0x78] sm:$0xff]  ;;  %v333_v5 = vld [vmem:[#allocation7 + $0x70] sm:$0xff]  ;;  %s531_s29 = sshll.u32 %s871_s19, 7  ;;  %s241_s5 = scalar_lea.vmem [#allocation8], %s524_s8 }
  0x57   : > { %561 = vmatprep.subr.mxu1 %v822_v0  ;;  %593 = vmatprep.mubr.msk.f32.mxu1 %vm823_vm0, %v822_v0  ;;  %v332_v6 = vld [vmem:[#allocation7 + $0x68] sm:$0xff]  ;;  %v331_v7 = vld [vmem:[#allocation7 + $0x60] sm:$0xff]  ;;  %v330_v8 = vld [vmem:[#allocation7 + $0x58] sm:$0xff]  ;;  %s427_s6 = sshll.u32 %s241_s5, 4  ;;  %s991_s13 = scalar_lea.hbm %s1032_s4, %s531_s29  ;;  %s428_s6 = int_to_ptr.vmem [resolvable:$true] %s427_s6 }
  0x58   : > { %555 = vmatpush3.msra.mxu0 %v244_v1  ;;  %562 = vmatpush3.msra.mxu1 %v334_v4  ;;  %v329_v9 = vld [vmem:[#allocation7 + $0x50] sm:$0xff]  ;;  %v328_v10 = vld [vmem:[#allocation7 + $0x48] sm:$0xff]  ;;  %v327_v11 = vld [vmem:[#allocation7 + $0x40] sm:$0xff]  ;;  %s414_s25 = scalar_lea.sflag [#allocation4], %s968_s30  ;;  %s747_s26 = scalar_lea.vmem %s428_s6, 128 }
  0x59   : > { %556 = vmatprep.subr.mxu0 %v822_v0  ;;  %563 = vmatprep.subr.mxu1 %v822_v0  ;;  %v326_v12 = vld [vmem:[#allocation7 + $0x38] sm:$0xff]  ;;  %v325_v13 = vld [vmem:[#allocation7 + $0x30] sm:$0xff]  ;;  %v324_v14 = vld [vmem:[#allocation7 + $0x28] sm:$0xff]  ;;  %p748_p11 = scmp.ne.s32.totalorder %s428_s6, %s747_s26  ;;  %p1048_p0 = scmp.ne.s32.totalorder %s1042_s14, 0 }
  0x5a   : > { %557 = vmatpush3.msra.mxu0 %v243_v2  ;;  %564 = vmatpush3.msra.mxu1 %v333_v5  ;;  %v323_v15 = vld [vmem:[#allocation7 + $0x20] sm:$0xff]  ;;  %v322_v16 = vld [vmem:[#allocation7 + $0x18] sm:$0xff]  ;;  %v321_v17 = vld [vmem:[#allocation7 + $0x10] sm:$0xff]  ;;  %s824_s19 = smov [#allocation8]  }
  0x5b   : > { %559 = vmatmul.mubr.msk.f32.vlgmr.msra.gmra.mxu0 %vm245_vm1, %v242_v3  ;;  %565 = vmatprep.subr.mxu1 %v822_v0  ;;  %v320_v18 = vld [vmem:[#allocation7 + $0x8] sm:$0xff]  ;;  %v319_v19 = vld [vmem:[#allocation7] sm:$0xff]  ;;  %p749_p1 = pnand %p748_p11, %p1048_p0  ;;  %s751_s24 = sshll.u32 %s824_s19, 4  ;;  %s752_s24 = int_to_ptr.vmem [resolvable:$false] %s751_s24 }
  0x5c   : > { %566 = vmatpush3.msra.mxu1 %v332_v6  ;;  %v529_v22 = vld [vmem:[%s1031_s3] ss:$0 sm:$0xff]  ;;  %s753_s27 = scalar_lea.vmem %s752_s24, 256  ;;  %p754_p6 = scmp.lt.s32.totalorder %s428_s6, %s752_s24 }
  0x5d   : > { %567 = vmatprep.subr.mxu1 %v822_v0  ;;  %p750_p2 = pneg %p749_p1  ;;  %p755_p12 = scmp.lt.s32.totalorder %s753_s27, %s747_s26 }
  0x5e   : > { %568 = vmatpush3.msra.mxu1 %v331_v7 }
  0x5f   : > { %569 = vmatprep.subr.mxu1 %v822_v0  ;;  %p756_p7 = por %p755_p12, %p754_p6 }
  0x60   : > { %570 = vmatpush3.msra.mxu1 %v330_v8 }
  0x61   : > { %571 = vmatprep.subr.mxu1 %v822_v0  ;;  %p757_p9 = pnand %p756_p7, %p750_p2 }
  0x62   : > { %572 = vmatpush3.msra.mxu1 %v329_v9 }
  0x63   : > { %573 = vmatprep.subr.mxu1 %v822_v0 }
  0x64   : > { %574 = vmatpush3.msra.mxu1 %v328_v10 }
  0x65   : > { %575 = vmatprep.subr.mxu1 %v822_v0 }
  0x66   : > { %576 = vmatpush3.msra.mxu1 %v327_v11 }
  0x67   : > { %577 = vmatprep.subr.mxu1 %v822_v0 }
  0x68   : > { %578 = vmatpush3.msra.mxu1 %v326_v12 }
  0x69   : > { %579 = vmatprep.subr.mxu1 %v822_v0 }
  0x6a   : > { %580 = vmatpush3.msra.mxu1 %v325_v13 }
  0x6b   : > { %581 = vmatprep.subr.mxu1 %v822_v0 }
  0x6c   : > { %582 = vmatpush3.msra.mxu1 %v324_v14 }
  0x6d   : > { %583 = vmatprep.subr.mxu1 %v822_v0 }
  0x6e   : > { %584 = vmatpush3.msra.mxu1 %v323_v15 }
  0x6f   : > { %585 = vmatprep.subr.mxu1 %v822_v0 }
  0x70   : > { %586 = vmatpush3.msra.mxu1 %v322_v16 }
  0x71   : > { %587 = vmatprep.subr.mxu1 %v822_v0 }
  0x72   : > { %588 = vmatpush3.msra.mxu1 %v321_v17 }
  0x73   : > { %589 = vmatprep.subr.mxu1 %v822_v0 }
  0x74   : > { %590 = vmatpush3.msra.mxu1 %v320_v18 }
  0x75   : > { %591 = vmatprep.subr.mxu1 %v822_v0 }
  0x76   : > { %592 = vmatpush3.msra.mxu1 %v319_v19 }
 0x11b   : > { %v315_v20 = vpop.f32.mrf.mxu0 }
 0x11c   : > { %594 = vmatmul.mubr.f32.vlgmr.msra.gmra.mxu1 %v315_v20 }
 0x11d   : > { %v560_v21 = vpop.f32.mrf.mxu0 }
 0x1dc   : > { %v408_v23 = vpop.f32.mrf.mxu1 }
 0x1dd   : > { %v409_v24 = vadd.f32 %v529_v22, %v408_v23 }
 0x1de   : > { %v595_v25 = vpop.f32.mrf.mxu1 }
 0x1df   : > { %412 = vst [vmem:[%s241_s5] sm:$0xff] %v409_v24 }
 0x1e0   : > { %760 = shalt.err (!%p757_p9)
}
 0x1e1   : > { %s761_s28 = scalar_lea.hbm %s991_s13, 128  ;;  %s765_s9 = scalar_lea.hbm %s1032_s4, 256 }
 0x1e2   : > { %p762_p13 = scmp.ne.s32.totalorder %s991_s13, %s761_s28  ;;  %p766_p4 = scmp.lt.s32.totalorder %s991_s13, %s1032_s4 }
 0x1e3   : > { %p767_p8 = scmp.lt.s32.totalorder %s765_s9, %s761_s28 }
 0x1e4   : > { %p763_p5 = pnand %p762_p13, %p1048_p0 }
 0x1e5   : > { %p768_p3 = por %p767_p8, %p766_p4 }
 0x1e6   : > { %p764_p10 = pneg %p763_p5 }
 0x1e8   : > { %p769_p11 = pnand %p768_p3, %p764_p10 }
 0x1ea   : > { %772 = shalt.err (!%p769_p11)
}
 0x1eb   : > { %606 = dma.vmem_to_hbm [thread:$0]  (%p1048_p0), %s428_s6, 128, %s991_s13, %s414_s25  }
 0x1ec PF: > { %s439_s23 = sand.u32 1, %s803_s15   ;;  %p1049_p1 = scmp.ne.s32.totalorder %s1038_s22, 0 }
 0x1ed   : > { %p1050_p2 = scmp.ge.s32.totalorder %s815_s18, 2  ;;  %s440_s29 = scalar_lea.sflag [#allocation4], %s439_s23 }
 0x1ef   : > { %p620_p6 = pnand %p1050_p2, %p1049_p1 }
 0x1f1   : > { %p621_p12 = pneg %p620_p6 }
 0x1f3   : > { %798 = dma.done.wait (%p621_p12), %s440_s29, 128  }
 0x1f4   : > { %800 = vsyncadd (%p621_p12), %s440_s29, 4294967168  ;;  %p18_p7 = scmp.ge.s32.totalorder %s922_s11, 4   ;;  %s1051_s15 = smov %s807_s16 }
 0x1f5   : > { %s1052_s16 = smov %s811_s17  ;;  %s1053_s17 = smov %s938_s20 }
 0x1f6   : > { %s1054_s18 = smov %s922_s11  ;;  %20 = sbr.rel (!%p18_p7) target bundleno = 6 (0x6), region = 89 }
 0x1fb   :  { %445 = vsyncpa [#allocation3], 1 }
 0x1fc   :  { %447 = vsyncpa [#allocation3 + $0x1], 1 }
 0x1fd   :  { %448 = vsyncpa [#allocation6], 1 }
 0x1fe   :  { %449 = vsyncpa [#allocation4], 1 }
 0x1ff   :  { %451 = vsyncpa [#allocation4 + $0x1], 1 }

</bundles_post_ra>
